<compile_context>
chip_gen: v7x
topology: tpu7x:2x2x1
jax: 0.10.0
libtpu: 0.0.40
codegen_flags: <defaults>
</compile_context>

<pallas_src>
import functools
import math

import jax
import jax.numpy as jnp
from jax import lax
from jax.experimental import pallas as pl
from jax.experimental.pallas import tpu as pltpu


def _sdpa_kernel(*refs, scale, has_mask):
    if has_mask:
        q_ref, k_ref, v_ref, m_ref, o_ref = refs
    else:
        q_ref, k_ref, v_ref, o_ref = refs
        m_ref = None

    q = q_ref[...]                    # (tq, Dk)
    k = k_ref[...]                    # (S,  Dk)
    v = v_ref[...]                    # (S,  Dv)

    # energy = Q @ K^T : contract the feature dims directly on the MXU.
    energy = lax.dot_general(
        q, k,
        dimension_numbers=(((1,), (1,)), ((), ())),
        preferred_element_type=jnp.float32,
    )                                 # (tq, S) f32

    if has_mask:
        # masked_fill(mask == 0, -1e20) BEFORE scaling, same as the torch code.
        energy = jnp.where(m_ref[...] == 0, jnp.float32(-1e20), energy)

    scaled = energy * jnp.float32(scale)

    # Numerically-stable softmax over the full key dimension (exact, single
    # pass, no running state).
    row_max = jnp.max(scaled, axis=-1, keepdims=True)      # (tq, 1)
    p = jnp.exp(scaled - row_max)                          # (tq, S)
    denom = jnp.sum(p, axis=-1, keepdims=True)             # (tq, 1)
    attn = p / denom                                       # exact division

    out = jnp.dot(attn, v, preferred_element_type=jnp.float32)   # (tq, Dv)
    o_ref[...] = out.astype(o_ref.dtype)


def _pick_tile(dim, target, multiple):
    """Largest tile <= target that divides `dim` and is a multiple of
    `multiple`; falls back to the full dimension (always legal)."""
    if dim <= target:
        return dim
    t = (min(target, dim) // multiple) * multiple
    while t >= multiple:
        if dim % t == 0:
            return t
        t -= multiple
    return dim


def scaled_dot_product_attention(queries, keys, values, mask=None, *, tq=None):
    """attn(Q, K, V) = softmax(mask_fill(Q K^T) / sqrt(d_k)) V"""
    B, S, Dk = queries.shape
    Dv = values.shape[-1]
    assert keys.shape == (B, S, Dk)
    assert values.shape == (B, S, Dv)

    has_mask = mask is not None
    if has_mask:
        assert mask.shape == (B, S, S)
        mask = mask.astype(jnp.float32)   # zero stays zero -> same masked set

    # q tiles need sublane multiples (8); full-extent tiles are always legal
    # (small-shape / test path).
    if tq is None:
        tq = _pick_tile(S, 256, 8)
    grid = (B, S // tq)

    # 1 / sqrt(keys_dim), same as torch: 1 / torch.sqrt(torch.tensor(d_k))
    scale = 1.0 / math.sqrt(float(Dk))

    kernel = functools.partial(_sdpa_kernel, scale=scale, has_mask=has_mask)

    in_specs = [
        pl.BlockSpec((None, tq, Dk), lambda b, qi: (b, qi, 0)),
        pl.BlockSpec((None, S, Dk), lambda b, qi: (b, 0, 0)),
        pl.BlockSpec((None, S, Dv), lambda b, qi: (b, 0, 0)),
    ]
    args = [queries, keys, values]
    if has_mask:
        in_specs.append(pl.BlockSpec((None, tq, S), lambda b, qi: (b, qi, 0)))
        args.append(mask)

    itemsize = jnp.dtype(queries.dtype).itemsize
    bytes_accessed = (queries.size + keys.size + values.size) * itemsize \
        + B * S * Dv * itemsize
    if has_mask:
        bytes_accessed += B * S * S * 4
    cost = pl.CostEstimate(
        flops=2 * B * S * S * (Dk + Dv),
        transcendentals=B * S * S,
        bytes_accessed=bytes_accessed,
    )

    return pl.pallas_call(
        kernel,
        out_shape=jax.ShapeDtypeStruct((B, S, Dv), queries.dtype),
        grid=grid,
        in_specs=in_specs,
        out_specs=pl.BlockSpec((None, tq, Dv), lambda b, qi: (b, qi, 0)),
        compiler_params=pltpu.CompilerParams(
            dimension_semantics=("parallel", "parallel"),
        ),
        cost_estimate=cost,
    )(*args)


def _reference(queries, keys, values, mask, keys_dim):
    energy = jnp.einsum("bqd,bkd->bqk", queries, keys)
    if mask is not None:
        energy = jnp.where(mask == 0, jnp.float32(-1e20), energy)
    scaled = energy * (1.0 / jnp.sqrt(jnp.float32(keys_dim)))
    attn = jax.nn.softmax(scaled, axis=-1)
    return jnp.einsum("bqk,bkd->bqd", attn, values)


if __name__ == "__main__":
    B, S, Dk, Dv = 2, 8, 32, 32

    key = jax.random.PRNGKey(0)
    kq, kk, kv = jax.random.split(key, 3)
    queries = jax.random.normal(kq, (B, S, Dk), dtype=jnp.float32)
    keys = jax.random.normal(kk, (B, S, Dk), dtype=jnp.float32)
    values = jax.random.normal(kv, (B, S, Dv), dtype=jnp.float32)

    # same mask the Transformer builds: upper-triangular ones over the batch
    tri = jnp.triu(jnp.ones((S, S), dtype=jnp.float32))
    mask = jnp.broadcast_to(tri[None], (B, S, S))

    out = jax.block_until_ready(
        scaled_dot_product_attention(queries, keys, values, mask))
    ref = _reference(queries, keys, values, mask, Dk)
    assert out.shape == (B, S, Dv)
    assert jnp.allclose(out, ref, atol=2e-3, rtol=2e-3), \
        "mismatch vs reference (masked)"

    # mask=None path: separate kernel variant, no mask transfer at all
    out_nm = jax.block_until_ready(
        scaled_dot_product_attention(queries, keys, values, None))
    ref_nm = _reference(queries, keys, values, None, Dk)
    assert jnp.allclose(out_nm, ref_nm, atol=2e-3, rtol=2e-3), \
        "mismatch vs reference (no mask)"

    print("KERNEL_OK")
</pallas_src>

<mosaic_0001>
module attributes {stable_mosaic.version = 11 : i64} {
  func.func @_sdpa_kernel(%arg0: i32, %arg1: i32, %arg2: memref<1x8x32xf32, #tpu.memory_space<vmem>>, %arg3: memref<1x8x32xf32, #tpu.memory_space<vmem>>, %arg4: memref<1x8x32xf32, #tpu.memory_space<vmem>>, %arg5: memref<1x8x8xf32, #tpu.memory_space<vmem>>, %arg6: memref<1x8x32xf32, #tpu.memory_space<vmem>>) attributes {dimension_semantics = [#tpu.dimension_semantics<parallel>, #tpu.dimension_semantics<parallel>], iteration_bounds = array<i64: 2, 1>, scalar_prefetch = 0 : i64, scratch_operands = 0 : i64, tpu.core_type = #tpu.core_type<tc>, window_params = [{transform_indices = @transform_0, window_bounds = array<i64: 1, 8, 32>}, {transform_indices = @transform_1, window_bounds = array<i64: 1, 8, 32>}, {transform_indices = @transform_2, window_bounds = array<i64: 1, 8, 32>}, {transform_indices = @transform_3, window_bounds = array<i64: 1, 8, 8>}, {transform_indices = @transform_4, window_bounds = array<i64: 1, 8, 32>}]} {
    %c0 = arith.constant 0 : index
    %c0_0 = arith.constant 0 : index
    %c0_1 = arith.constant 0 : index
    %0 = vector.load %arg2[%c0, %c0_0, %c0_1] : memref<1x8x32xf32, #tpu.memory_space<vmem>>, vector<1x8x32xf32>
    %1 = vector.shape_cast %0 : vector<1x8x32xf32> to vector<8x32xf32>
    %c0_2 = arith.constant 0 : index
    %c0_3 = arith.constant 0 : index
    %c0_4 = arith.constant 0 : index
    %2 = vector.load %arg3[%c0_2, %c0_3, %c0_4] : memref<1x8x32xf32, #tpu.memory_space<vmem>>, vector<1x8x32xf32>
    %3 = vector.shape_cast %2 : vector<1x8x32xf32> to vector<8x32xf32>
    %c0_5 = arith.constant 0 : index
    %c0_6 = arith.constant 0 : index
    %c0_7 = arith.constant 0 : index
    %4 = vector.load %arg4[%c0_5, %c0_6, %c0_7] : memref<1x8x32xf32, #tpu.memory_space<vmem>>, vector<1x8x32xf32>
    %5 = vector.shape_cast %4 : vector<1x8x32xf32> to vector<8x32xf32>
    %cst = arith.constant dense<0.000000e+00> : vector<8x8xf32>
    %6 = tpu.matmul %1, %3, %cst {dimension_numbers = #tpu.dot_dimension_numbers<[1], [1], [0], [0], [0, 0, 1, 0], [], []>} : vector<8x32xf32>, vector<8x32xf32>, vector<8x8xf32> -> vector<8x8xf32>
    %c0_8 = arith.constant 0 : index
    %c0_9 = arith.constant 0 : index
    %c0_10 = arith.constant 0 : index
    %7 = vector.load %arg5[%c0_8, %c0_9, %c0_10] : memref<1x8x8xf32, #tpu.memory_space<vmem>>, vector<1x8x8xf32>
    %8 = vector.shape_cast %7 : vector<1x8x8xf32> to vector<8x8xf32>
    %cst_11 = arith.constant 0.000000e+00 : f32
    %9 = vector.broadcast %cst_11 : f32 to vector<8x8xf32>
    %10 = arith.cmpf oeq, %8, %9 : vector<8x8xf32>
    %cst_12 = arith.constant -1.000000e+20 : f32
    %11 = vector.broadcast %cst_12 : f32 to vector<8x8xf32>
    %12 = arith.select %10, %11, %6 : vector<8x8xi1>, vector<8x8xf32>
    %cst_13 = arith.constant 0.176776692 : f32
    %13 = vector.broadcast %cst_13 : f32 to vector<8x8xf32>
    %14 = arith.mulf %12, %13 : vector<8x8xf32>
    %cst_14 = arith.constant dense<0xFF800000> : vector<8xf32>
    %15 = vector.multi_reduction <maximumf>, %14, %cst_14 [1] : vector<8x8xf32> to vector<8xf32>
    %16 = vector.shape_cast %15 : vector<8xf32> to vector<8x1xf32>
    %17 = vector.broadcast %16 : vector<8x1xf32> to vector<8x8xf32>
    %18 = arith.subf %14, %17 : vector<8x8xf32>
    %19 = math.exp %18 : vector<8x8xf32>
    %cst_15 = arith.constant dense<0.000000e+00> : vector<8xf32>
    %20 = vector.multi_reduction <add>, %19, %cst_15 [1] : vector<8x8xf32> to vector<8xf32>
    %21 = vector.shape_cast %20 : vector<8xf32> to vector<8x1xf32>
    %22 = vector.broadcast %21 : vector<8x1xf32> to vector<8x8xf32>
    %23 = arith.divf %19, %22 : vector<8x8xf32>
    %cst_16 = arith.constant dense<0.000000e+00> : vector<8x32xf32>
    %24 = tpu.matmul %23, %5, %cst_16 {dimension_numbers = #tpu.dot_dimension_numbers<[1], [0], [0], [1], [0, 0, 1, 1], [], []>} : vector<8x8xf32>, vector<8x32xf32>, vector<8x32xf32> -> vector<8x32xf32>
    %c0_17 = arith.constant 0 : index
    %c0_18 = arith.constant 0 : index
    %c0_19 = arith.constant 0 : index
    %25 = vector.load %arg6[%c0_17, %c0_18, %c0_19] : memref<1x8x32xf32, #tpu.memory_space<vmem>>, vector<1x8x32xf32>
    %26 = vector.shape_cast %25 : vector<1x8x32xf32> to vector<8x32xf32>
    %27 = vector.shape_cast %24 : vector<8x32xf32> to vector<1x8x32xf32>
    tpu.vector_store %arg6[%c0_17, %c0_18, %c0_19], %27 {strides = array<i32>} : memref<1x8x32xf32, #tpu.memory_space<vmem>>, vector<1x8x32xf32>,
    return
  }
  func.func @transform_0(%arg0: i32, %arg1: i32) -> (i32, i32, i32) {
    %c0_i32 = arith.constant 0 : i32
    %c0_i32_0 = arith.constant 0 : i32
    return %arg0, %arg1, %c0_i32 : i32, i32, i32
  }
  func.func @transform_1(%arg0: i32, %arg1: i32) -> (i32, i32, i32) {
    %c0_i32 = arith.constant 0 : i32
    %c0_i32_0 = arith.constant 0 : i32
    %c0_i32_1 = arith.constant 0 : i32
    return %arg0, %c0_i32, %c0_i32_0 : i32, i32, i32
  }
  func.func @transform_2(%arg0: i32, %arg1: i32) -> (i32, i32, i32) {
    %c0_i32 = arith.constant 0 : i32
    %c0_i32_0 = arith.constant 0 : i32
    %c0_i32_1 = arith.constant 0 : i32
    return %arg0, %c0_i32, %c0_i32_0 : i32, i32, i32
  }
  func.func @transform_3(%arg0: i32, %arg1: i32) -> (i32, i32, i32) {
    %c0_i32 = arith.constant 0 : i32
    %c0_i32_0 = arith.constant 0 : i32
    return %arg0, %arg1, %c0_i32 : i32, i32, i32
  }
  func.func @transform_4(%arg0: i32, %arg1: i32) -> (i32, i32, i32) {
    %c0_i32 = arith.constant 0 : i32
    %c0_i32_0 = arith.constant 0 : i32
    return %arg0, %arg1, %c0_i32 : i32, i32, i32
  }
}

</mosaic_0001>

<bundles_post_ra>
// kernel: tpu_custom_call.1
= control target key start
LH: loop header
LB: loop body
LE: loop exit
PB: predicated region body
PF: predicated region fallthrough
CT: control target
= control target key end

     0   :  { %s1342_s0 = inlined_call_operand.hbm [shape: f32[2,8,32], index: 0, kind: input, shape index: {}]   ;;  %s1343_s1 = inlined_call_operand.hbm [shape: f32[2,8,32], index: 1, kind: input, shape index: {}]   ;;  %s1344_s2 = inlined_call_operand.hbm [shape: f32[2,8,32], index: 2, kind: input, shape index: {}]   ;;  %s1345_s3 = inlined_call_operand.hbm [shape: f32[2,8,8], index: 3, kind: input, shape index: {}]   ;;  %s1346_s4 = inlined_call_operand.hbm [shape: f32[2,8,32], index: 4, kind: output, shape index: {}]  }
   0x1   :  { %1356 = sst [smem:[#allocation20_spill]] %s1343_s1 }
   0x2   :  { %9 = vsyncpa [#allocation3], 0 }
   0x3   :  { %11 = vsyncpa [#allocation3 + $0x1], 0 }
   0x4   :  { %12 = vsyncpa [#allocation6], 0 }
   0x5   :  { %14 = vsyncpa [#allocation6 + $0x1], 0 }
   0x6   :  { %15 = vsyncpa [#allocation9], 0 }
   0x7   :  { %17 = vsyncpa [#allocation9 + $0x1], 0 }
   0x8   :  { %18 = vsyncpa [#allocation4], 0 }
   0x9   :  { %20 = vsyncpa [#allocation4 + $0x1], 0  ;;  %s1039_s15 = smov 0   ;;  %s1041_s16 = smov 0  }
   0xa   :  { %s1043_s17 = smov 0   ;;  %s1045_s18 = smov 0  }
   0xb   :  { %s1047_s19 = smov 0   ;;  %s1049_s20 = smov 0  }
   0xc LB: > { %1357 = sst [smem:[#allocation15_spill]] %s993_s17  ;;  %s1070_s21 = sadd.s32 4294967295, %s1005_s20   ;;  %s1005_s20 = sphi %s1049_s20, %s26_s20   ;;  %s1001_s19 = sphi %s1047_s19, %s1383_s19   ;;  %s997_s18 = sphi %s1045_s18, %s1382_s18   ;;  %s993_s17 = sphi %s1043_s17, %s1381_s17   ;;  %s989_s16 = sphi %s1041_s16, %s1385_s16   ;;  %s985_s15 = sphi %s1039_s15, %s1384_s15  }
   0xd   : > { %1358 = sst [smem:[#allocation16_spill]] %s1001_s19  ;;  %s674_s22 = sadd.s32 4294967294, %s1005_s20  }
   0xe   : > { %1359 = sst [smem:[#allocation17_spill]] %s1005_s20  ;;  %s38_s23 = sadd.s32 1, %s1001_s19 }
   0xf   : > { %s47_s24 = sadd.s32 1, %s993_s17  ;;  %p40_p0 = scmp.ge.s32.totalorder %s38_s23, 2 }
  0x10   : > { %p54_p1 = scmp.ne.s32.totalorder %s993_s17, %s989_s16  ;;  %p55_p2 = scmp.eq.s32.totalorder %s1005_s20, 0 }
  0x11   : > { %p60_p3 = scmp.ne.s32.totalorder %s989_s16, %s985_s15  ;;  %s1387_s23 = smov (%p40_p0, %s38_s23), 0 }
  0x12   : > { %1360 = sst [smem:[#allocation18_spill]] %s1387_s23  ;;  %p1082_p4 = por %p55_p2, %p54_p1 }
  0x13   : > { %p61_p5 = scmp.eq.s32.totalorder %s1070_s21, 0  ;;  %s42_s26 = ssub.s32 %s1001_s19, %s1387_s23 }
  0x14   : > { %p166_p6 = scmp.eq.s32.totalorder %s1070_s21, 1  ;;  %p45_p7 = scmp.eq.s32.totalorder %s42_s26, 0 }
  0x15   : > { %p1090_p8 = por %p61_p5, %p60_p3  ;;  %p172_p10 = scmp.eq.s32.totalorder %s674_s22, 1 }
  0x16   : > { %p1094_p9 = por %p166_p6, %p54_p1  ;;  %p739_p13 = scmp.lt.s32.totalorder %s1005_s20, 2 }
  0x17   : > { %s1362_s27 = scalar_select %p1090_p8, 1, 0 }
  0x18   : > { %s1363_s28 = scalar_select %p1094_p9, 1, 0 }
  0x19   : > { %s1099_s29 = scalar_select %p45_p7, %s993_s17, %s47_s24  }
  0x1a   : > { %p1101_p11 = por %p172_p10, %p60_p3  ;;  %s1108_s5 = sand.u32 1, %s993_s17  }
  0x1b   : > { %1364 = sst [smem:[#allocation19_spill]] %s1099_s29  ;;  %s1111_s6 = sshll.u32 %s1108_s5, 3 }
  0x1c   : > { %s1365_s30 = scalar_select %p1101_p11, 1, 0 }
  0x1d   : > { %s1114_s7 = sshll.u32 %s1001_s19, 7  ;;  %p1118_p0 = pnand %p739_p13, %p1082_p4 }
  0x1e   : > { %s211_s9 = sand.u32 1, %s1005_s20   ;;  %s1367_s1 = sld [smem:[#allocation20_spill]] }
  0x1f   : > { %s1366_s8 = scalar_select %p1118_p0, 1, 0 }
  0x20   : > { %s215_s13 = scalar_lea.vmem [#allocation5], %s1111_s6  ;;  %s1134_s22 = scalar_lea.sflag [#allocation6], %s211_s9 }
  0x21   : > { %s222_s14 = sshll.u32 %s215_s13, 4  ;;  %p1140_p4 = pneg %p1118_p0  ;;  %s1131_s14 = int_to_ptr.vmem [resolvable:$true] %s222_s14 }
  0x24   : > { %s1127_s12 = scalar_lea.hbm %s1367_s1, %s1114_s7  ;;  %s800_s11 = scalar_lea.hbm %s1367_s1, 256 }
  0x25   : > { %s795_s24 = scalar_lea.hbm %s1127_s12, 128  ;;  %p801_p7 = scmp.lt.u32.totalorder %s1127_s12, %s1367_s1 }
  0x26   : > { %p796_p3 = scmp.ne.s32.totalorder %s1127_s12, %s795_s24  ;;  %p802_p10 = scmp.lt.u32.totalorder %s800_s11, %s795_s24 }
  0x27   : > { %p804_p12 = scmp.lt.u32.totalorder %s795_s24, %s1127_s12 }
  0x28   : > { %p798_p5 = pnand %p1140_p4, %p796_p3  ;;  %p803_p13 = por %p802_p10, %p801_p7 }
  0x2a   : > { %p799_p6 = pneg %p798_p5  ;;  %p805_p1 = por %p804_p12, %p803_p13 }
  0x2c   : > { %p806_p2 = pnand %p805_p1, %p799_p6 }
  0x2e   : > { %809 = shalt.err (!%p806_p2)
}
  0x2f   : > { %s810_s9 = scalar_lea.vmem %s1131_s14, 128  ;;  %s1007_s26 = smov [#allocation5]  }
  0x30   : > { %p811_p3 = scmp.ne.s32.totalorder %s1131_s14, %s810_s9  ;;  %s815_s10 = sshll.u32 %s1007_s26, 4  ;;  %s816_s10 = int_to_ptr.vmem [resolvable:$false] %s815_s10 }
  0x31   : > { %s817_s23 = scalar_lea.vmem %s816_s10, 256  ;;  %p818_p9 = scmp.lt.s32.totalorder %s1131_s14, %s816_s10 }
  0x32   : > { %p813_p5 = pnand %p811_p3, %p1140_p4  ;;  %p819_p8 = scmp.lt.s32.totalorder %s817_s23, %s810_s9 }
  0x34   : > { %p814_p11 = pneg %p813_p5  ;;  %p820_p7 = por %p819_p8, %p818_p9 }
  0x36   : > { %p821_p10 = pnand %p820_p7, %p814_p11 }
  0x38   : > { %824 = shalt.err (!%p821_p10)
}
  0x39   : > { %728 = dma.hbm_to_vmem [thread:$0]  (!%p1118_p0), %s1127_s12, 128, %s1131_s14, %s1134_s22  }
  0x3a   : > { %p1369_p12 = scmp.lt.s32.totalorder %s1005_s20, 3  ;;  %p1370_p1 = scmp.ge.s32.totalorder %s1005_s20, 1 }
  0x3b   : > { %s1176_s9 = scalar_lea.hbm %s1342_s0, %s1114_s7  ;;  %s196_s26 = scalar_lea.vmem [#allocation2], %s1111_s6 }
  0x3c   : > { %p1168_p2 = pnand %p1370_p1, %p1369_p12  ;;  %s204_s10 = sshll.u32 %s196_s26, 4  ;;  %s1179_s10 = int_to_ptr.vmem [resolvable:$true] %s204_s10 }
  0x3d   : > { %s1185_s23 = scalar_lea.hbm %s1344_s2, %s1114_s7  ;;  %s193_s1 = scalar_lea.sflag [#allocation3], %s1108_s5 }
  0x3e   : > { %s1371_s24 = scalar_select %p1168_p2, 1, 0 }
  0x3f   : > { %s825_s19 = scalar_lea.hbm %s1176_s9, 128  ;;  %s830_s29 = scalar_lea.hbm %s1342_s0, 256 }
  0x40   : > { %p826_p8 = scmp.ne.s32.totalorder %s1176_s9, %s825_s19  ;;  %p831_p6 = scmp.lt.u32.totalorder %s1176_s9, %s1342_s0 }
  0x41   : > { %p832_p13 = scmp.lt.u32.totalorder %s830_s29, %s825_s19  ;;  %p834_p5 = scmp.lt.u32.totalorder %s825_s19, %s1176_s9 }
  0x42   : > { %p828_p9 = pnand %p826_p8, %p1140_p4 }
  0x43   : > { %p833_p3 = por %p832_p13, %p831_p6 }
  0x44   : > { %p829_p11 = pneg %p828_p9 }
  0x45   : > { %p835_p7 = por %p834_p5, %p833_p3 }
  0x47   : > { %p836_p10 = pnand %p835_p7, %p829_p11 }
  0x49   : > { %839 = shalt.err (!%p836_p10)
}
  0x4a   : > { %s840_s26 = scalar_lea.vmem %s1179_s10, 128  ;;  %s1008_s12 = smov [#allocation2]  }
  0x4b   : > { %p841_p12 = scmp.ne.s32.totalorder %s1179_s10, %s840_s26  ;;  %s845_s14 = sshll.u32 %s1008_s12, 4  ;;  %s846_s14 = int_to_ptr.vmem [resolvable:$false] %s845_s14 }
  0x4c   : > { %s847_s17 = scalar_lea.vmem %s846_s14, 256  ;;  %p848_p9 = scmp.lt.s32.totalorder %s1179_s10, %s846_s14 }
  0x4d   : > { %p843_p1 = pnand %p841_p12, %p1140_p4  ;;  %p849_p2 = scmp.lt.s32.totalorder %s847_s17, %s840_s26 }
  0x4f   : > { %p844_p8 = pneg %p843_p1  ;;  %p850_p6 = por %p849_p2, %p848_p9 }
  0x51   : > { %p851_p13 = pnand %p850_p6, %p844_p8 }
  0x53   : > { %854 = shalt.err (!%p851_p13)
}
  0x54   : > { %725 = dma.hbm_to_vmem [thread:$0]  (!%p1118_p0), %s1176_s9, 128, %s1179_s10, %s193_s1  }
  0x55   : > { %s233_s19 = scalar_lea.vmem [#allocation7], %s1111_s6  ;;  %s855_s29 = scalar_lea.hbm %s1185_s23, 128 }
  0x56   : > { %s240_s20 = sshll.u32 %s233_s19, 4  ;;  %p856_p11 = scmp.ne.s32.totalorder %s1185_s23, %s855_s29  ;;  %s241_s20 = int_to_ptr.vmem [resolvable:$true] %s240_s20 }
  0x57   : > { %s860_s26 = scalar_lea.hbm %s1344_s2, 256  ;;  %p861_p5 = scmp.lt.u32.totalorder %s1185_s23, %s1344_s2 }
  0x58   : > { %p858_p2 = pnand %p856_p11, %p1140_p4  ;;  %p862_p7 = scmp.lt.u32.totalorder %s860_s26, %s855_s29 }
  0x59   : > { %p864_p12 = scmp.lt.u32.totalorder %s855_s29, %s1185_s23 }
  0x5a   : > { %p859_p3 = pneg %p858_p2  ;;  %p863_p10 = por %p862_p7, %p861_p5 }
  0x5c   : > { %p865_p1 = por %p864_p12, %p863_p10 }
  0x5e   : > { %p866_p8 = pnand %p865_p1, %p859_p3 }
  0x60   : > { %869 = shalt.err (!%p866_p8)
}
  0x61   : > { %s870_s1 = scalar_lea.vmem %s241_s20, 128  ;;  %s1009_s9 = smov [#allocation7]  }
  0x62   : > { %p871_p9 = scmp.ne.s32.totalorder %s241_s20, %s870_s1  ;;  %s875_s10 = sshll.u32 %s1009_s9, 4  ;;  %s876_s10 = int_to_ptr.vmem [resolvable:$false] %s875_s10 }
  0x63   : > { %s877_s17 = scalar_lea.vmem %s876_s10, 256  ;;  %p878_p11 = scmp.lt.s32.totalorder %s241_s20, %s876_s10 }
  0x64   : > { %p873_p6 = pnand %p871_p9, %p1140_p4  ;;  %p879_p2 = scmp.lt.s32.totalorder %s877_s17, %s870_s1 }
  0x66   : > { %p874_p13 = pneg %p873_p6  ;;  %p880_p0 = por %p879_p2, %p878_p11 }
  0x68   : > { %p881_p5 = pnand %p880_p0, %p874_p13 }
  0x6a   : > { %884 = shalt.err (!%p881_p5)
}
  0x6b   : > { %p1372_p7 = scmp.ne.s32.totalorder %s1366_s8, 0  ;;  %s1232_s11 = scalar_lea.hbm %s1345_s3, %s1114_s7 }
  0x6c   : > { %s251_s13 = scalar_lea.vmem [#allocation8], %s1111_s6  ;;  %s248_s12 = scalar_lea.sflag [#allocation9], %s1108_s5 }
  0x6d   : > { %731 = dma.hbm_to_vmem [thread:$0]  (!%p1372_p7), %s1185_s23, 128, %s241_s20, %s1134_s22  }
  0x6e   : > { %s259_s26 = sshll.u32 %s251_s13, 4  ;;  %s885_s14 = scalar_lea.hbm %s1232_s11, 128  ;;  %s260_s26 = int_to_ptr.vmem [resolvable:$true] %s259_s26 }
  0x6f   : > { %p886_p0 = scmp.ne.s32.totalorder %s1232_s11, %s885_s14  ;;  %s890_s23 = scalar_lea.hbm %s1345_s3, 256 }
  0x70   : > { %p891_p12 = scmp.lt.u32.totalorder %s1232_s11, %s1345_s3  ;;  %p892_p1 = scmp.lt.u32.totalorder %s890_s23, %s885_s14 }
  0x71   : > { %p888_p3 = pnand %p886_p0, %p1140_p4  ;;  %p894_p9 = scmp.lt.u32.totalorder %s885_s14, %s1232_s11 }
  0x72   : > { %p893_p8 = por %p892_p1, %p891_p12 }
  0x73   : > { %p889_p10 = pneg %p888_p3 }
  0x74   : > { %p895_p6 = por %p894_p9, %p893_p8 }
  0x76   : > { %p896_p13 = pnand %p895_p6, %p889_p10 }
  0x78   : > { %899 = shalt.err (!%p896_p13)
}
  0x79   : > { %s900_s5 = scalar_lea.vmem %s260_s26, 128  ;;  %s1010_s6 = smov [#allocation8]  }
  0x7a   : > { %p901_p11 = scmp.ne.s32.totalorder %s260_s26, %s900_s5  ;;  %s905_s9 = sshll.u32 %s1010_s6, 4  ;;  %s906_s9 = int_to_ptr.vmem [resolvable:$false] %s905_s9 }
  0x7b   : > { %s907_s10 = scalar_lea.vmem %s906_s9, 256  ;;  %p908_p0 = scmp.lt.s32.totalorder %s260_s26, %s906_s9 }
  0x7c   : > { %p903_p2 = pnand %p901_p11, %p1140_p4  ;;  %p909_p3 = scmp.lt.s32.totalorder %s907_s10, %s900_s5 }
  0x7e   : > { %p904_p5 = pneg %p903_p2  ;;  %p910_p7 = por %p909_p3, %p908_p0 }
  0x80   : > { %p911_p1 = pnand %p910_p7, %p904_p5 }
  0x82   : > { %914 = shalt.err (!%p911_p1)
}
  0x83   : > { %p1373_p12 = scmp.ne.s32.totalorder %s1366_s8, 0  ;;  %p1374_p10 = scmp.ne.s32.totalorder %s1371_s24, 0 }
  0x84   : > { %s1256_s25 = sand.u32 (!%p1374_p10), 1, %s989_s16   ;;  %p1375_p4 = scmp.ne.s32.totalorder (!%p1374_p10), %s1362_s27, 0 }
  0x85   : > { %734 = dma.hbm_to_vmem [thread:$0]  (!%p1373_p12), %s1232_s11, 128, %s260_s26, %s248_s12  }
  0x86   : > { %268 = sbr.rel (%p1374_p10) target bundleno = 909 (0x38d), region = 36  ;;  %s1259_s17 = sshll.u32 (!%p1374_p10), %s1256_s25, 3 }
  0x87   : > { %s271_s19 = scalar_lea.sflag (!%p1374_p10), [#allocation3], %s1256_s25  ;;  %s274_s29 = scalar_lea.vmem (!%p1374_p10), [#allocation2], %s1259_s17 }
  0x8d   : > { %968 = dma.done.wait (%p1375_p4), %s271_s19, 128  }
  0x8e   : > { %970 = vsyncadd (%p1375_p4), %s271_s19, 4294967168  ;;  %s279_s8 = sand.u32 1, %s1070_s21   ;;  %s283_s11 = scalar_lea.vmem [#allocation5], %s1259_s17 }
  0x8f   : > { %s280_s24 = scalar_lea.sflag [#allocation6], %s279_s8 }
  0x90   : > { %972 = dma.done.wait (%p1375_p4), %s280_s24, 256  }
  0x91   : > { %974 = vsyncadd (%p1375_p4), %s280_s24, 4294967040  ;;  %s292_s13 = scalar_lea.vmem [#allocation7], %s1259_s17  ;;  %s298_s26 = scalar_lea.sflag [#allocation9], %s1256_s25 }
  0x92   : > { %s301_s12 = scalar_lea.vmem [#allocation8], %s1259_s17 }
  0x93   : > { %976 = dma.done.wait (%p1375_p4), %s298_s26, 128  }
  0x94   : > { %978 = vsyncadd (%p1375_p4), %s298_s26, 4294967168  ;;  %v1011_v0 = vmov 0.0   ;;  %vm1012_vm0 = vmmov 0   ;;  %vm344_vm1 = vcmask 261120   ;;  %v342_v1 = vld [vmem:[%s283_s11] sm:$0xff]  ;;  %v341_v2 = vld [vmem:[%s274_s29] sm:$0xff] }
  0x95   : > { %702 = vmatprep.subr.mxu0 %v1011_v0  ;;  %704 = vmatprep.mubr.msk.f32.mxu0 %vm1012_vm0, %v1011_v0  ;;  %v421_v3 = vld [vmem:[%s301_s12] sm:$0xff]  ;;  %vm425_vm3 = vcmask 64512   ;;  %v343_v14 = vld [vmem:[%s292_s13] sm:$0xff]  ;;  %s695_s21 = sshll.u32 %s997_s18, 7  ;;  %s340_s27 = scalar_lea.vmem [#allocation10], %s1259_s17 }
  0x96   : > { %707 = vmatprep.subr.mxu1 %v1011_v0  ;;  %709 = vmatprep.mubr.msk.f32.mxu1 %vm1012_vm0, %v1011_v0  ;;  %vm422_vm2 = vcmp.eq.f32.partialorder %v421_v3, 0.0  ;;  %s526_s14 = sshll.u32 %s340_s27, 4  ;;  %s1292_s23 = scalar_lea.hbm %s1346_s4, %s695_s21  ;;  %s1294_s14 = int_to_ptr.vmem [resolvable:$true] %s526_s14 }
  0x97   : > { %703 = vmatpush3.xpose.msk.msra.mxu0 %vm344_vm1, %v342_v1  ;;  %708 = vmatpush3.msra.mxu1 %v343_v14  ;;  %s512_s20 = scalar_lea.sflag [#allocation4], %s1256_s25  ;;  %s915_s7 = scalar_lea.vmem %s1294_s14, 128 }
  0x98   : > { %p916_p7 = scmp.ne.s32.totalorder %s1294_s14, %s915_s7  ;;  %p1376_p8 = scmp.ne.s32.totalorder %s1363_s28, 0 }
  0x99   : > { %s1013_s18 = smov [#allocation10]  }
  0x9a   : > { %705 = vmatmul.mubr.msk.f32.vlgmr.msra.gmra.mrb[0].mxu0 %vm344_vm1, %v341_v2  ;;  %p917_p9 = pnand %p916_p7, %p1376_p8  ;;  %s919_s5 = sshll.u32 %s1013_s18, 4  ;;  %s920_s5 = int_to_ptr.vmem [resolvable:$false] %s919_s5 }
  0x9b   : > { %s921_s6 = scalar_lea.vmem %s920_s5, 256  ;;  %p922_p13 = scmp.lt.s32.totalorder %s1294_s14, %s920_s5 }
  0x9c   : > { %p918_p6 = pneg %p917_p9  ;;  %p923_p11 = scmp.lt.s32.totalorder %s921_s6, %s915_s7 }
  0x9e   : > { %p924_p2 = por %p923_p11, %p922_p13 }
  0xa0   : > { %p925_p5 = pnand %p924_p2, %p918_p6 }
 0x16d   : > { %v417_v4 = vpop.f32.mrb[0].mxu0 }
 0x16e   : > { %v423_v5 = vsel %vm422_vm2, -1e+20, %v417_v4  ;;  %v706_v6 = vpop.f32.mrb[1].mxu0 }
 0x16f   : > { %v424_v7 = vmul.f32 0.17677669, %v423_v5 }
 0x171   : > { %v426_v8 = vsel %vm425_vm3, %v424_v7, -inf }
 0x172   : > { %427 = vmax.xlane.f32.xlu0 %v426_v8 }
 0x1ff   : > { %v428_v9 = vpop.xlane.xlu0 %427 }
 0x200   : > { %v429_v10 = vsub.f32 %v424_v7, %v428_v9 }
 0x202   : > { %v430_v11 = vmul.f32 1.442695, %v429_v10 }
 0x204   : > { %791 = vpow2.f32 %v430_v11 }
 0x20e   : > { %v792_v12 = vpop.eup %791 }
 0x20f   : > { %v432_v13 = vsel %vm425_vm3, %v792_v12, 0.0 }
 0x210   : > { %433 = vadd.xlane.f32.xlu0 %v432_v13 }
 0x29d   : > { %v434_v15 = vpop.xlane.xlu0 %433 }
 0x29e   : > { %793 = vrcp.f32 %v434_v15 }
 0x2a8   : > { %v794_v16 = vpop.eup %793 }
 0x2a9   : > { %v436_v17 = vmul.f32 %v794_v16, %v792_v12 }
 0x2ab   : > { %710 = vmatmul.mubr.msk.f32.vlgmr.msra.gmra.mrb[0].mxu1 %vm425_vm3, %v436_v17 }
 0x37e   : > { %v506_v18 = vpop.f32.mrb[0].mxu1 }
 0x37f   : > { %510 = vst.msk [vmem:[%s340_s27] sm:$0xff] %vm344_vm1, %v506_v18  ;;  %v711_v19 = vpop.f32.mrb[1].mxu1 }
 0x380   : > { %928 = shalt.err (!%p925_p5)
}
 0x381   : > { %s929_s9 = scalar_lea.hbm %s1292_s23, 128  ;;  %s933_s17 = scalar_lea.hbm %s1346_s4, 256 }
 0x382   : > { %p930_p0 = scmp.ne.s32.totalorder %s1292_s23, %s929_s9  ;;  %p934_p12 = scmp.lt.u32.totalorder %s1292_s23, %s1346_s4 }
 0x383   : > { %p935_p10 = scmp.lt.u32.totalorder %s933_s17, %s929_s9  ;;  %p937_p7 = scmp.lt.u32.totalorder %s929_s9, %s1292_s23 }
 0x384   : > { %p931_p3 = pnand %p930_p0, %p1376_p8 }
 0x385   : > { %p936_p4 = por %p935_p10, %p934_p12 }
 0x386   : > { %p932_p1 = pneg %p931_p3 }
 0x387   : > { %p938_p9 = por %p937_p7, %p936_p4 }
 0x389   : > { %p939_p6 = pnand %p938_p9, %p932_p1 }
 0x38b   : > { %942 = shalt.err (!%p939_p6)
}
 0x38c   : > { %720 = dma.vmem_to_hbm [thread:$0]  (%p1376_p8), %s1294_s14, 128, %s1292_s23, %s512_s20  }
 0x38d PF: > { %s1377_s8 = sld [smem:[#allocation17_spill]]  ;;  %s538_s24 = sand.u32 1, %s985_s15  }
 0x38e   : > { %p1378_p13 = scmp.ne.s32.totalorder %s1365_s30, 0  ;;  %s539_s11 = scalar_lea.sflag [#allocation4], %s538_s24 }
 0x393   : > { %p1379_p11 = scmp.ge.s32.totalorder %s1377_s8, 2 }
 0x395   : > { %p736_p2 = pnand %p1379_p11, %p1378_p13 }
 0x397   : > { %980 = dma.done.wait (!%p736_p2), %s539_s11, 128  }
 0x398   : > { %982 = vsyncadd (!%p736_p2), %s539_s11, 4294967168  ;;  %s26_s20 = sadd.s32 1, %s1377_s8   ;;  %s1380_s13 = sld [smem:[#allocation15_spill]] }
 0x399   : > { %p23_p5 = scmp.ge.s32.totalorder %s26_s20, 4   ;;  %s1381_s17 = sld [smem:[#allocation19_spill]] }
 0x39a   : > { %s1382_s18 = sld [smem:[#allocation16_spill]]  ;;  %s1383_s19 = sld [smem:[#allocation18_spill]] }
 0x39b   : > { %s1384_s15 = smov %s989_s16  ;;  %25 = sbr.rel (!%p23_p5) target bundleno = 12 (0xc), region = 118 }
 0x39e   : > { %s1385_s16 = smov %s1380_s13 }
 0x3a2   :  { %544 = vsyncpa [#allocation3], 1 }
 0x3a3   :  { %546 = vsyncpa [#allocation3 + $0x1], 1 }
 0x3a4   :  { %547 = vsyncpa [#allocation6], 1 }
 0x3a5   :  { %549 = vsyncpa [#allocation6 + $0x1], 1 }
 0x3a6   :  { %550 = vsyncpa [#allocation9], 1 }
 0x3a7   :  { %552 = vsyncpa [#allocation9 + $0x1], 1 }
 0x3a8   :  { %553 = vsyncpa [#allocation4], 1 }
 0x3a9   :  { %555 = vsyncpa [#allocation4 + $0x1], 1 }

</bundles_post_ra>
